<compile_context>
chip_gen: v6e
topology: v6e:2x2x1
jax: 0.10.0
libtpu: 0.0.40
codegen_flags: <defaults>
</compile_context>

<pallas_src>
import jax
import jax.numpy as jnp
from jax.experimental import pallas as pl
from jax.experimental.pallas import tpu as pltpu


# ---------------------------------------------------------------------------
# Kernel
# ---------------------------------------------------------------------------
def _make_mlp_encode_kernel(tanh_dtype):
    def kernel(x_ref, w1_ref, b1_ref, w2_ref, b2_ref, w3_ref, b3_ref, o_ref):
        # x arrives as f32; cast to bf16 in-kernel (hidden under MXU work).
        x = x_ref[...].astype(jnp.bfloat16)                                  # [tb, D0]
        a1 = jnp.dot(x, w1_ref[...], preferred_element_type=jnp.float32) + b1_ref[...]
        h1 = jnp.tanh(a1.astype(tanh_dtype)).astype(jnp.bfloat16)           # bf16 tanh on v6e/v7x
        a2 = jnp.dot(h1, w2_ref[...], preferred_element_type=jnp.float32) + b2_ref[...]
        h2 = jnp.tanh(a2.astype(tanh_dtype)).astype(jnp.bfloat16)
        out = jnp.dot(h2, w3_ref[...], preferred_element_type=jnp.float32) + b3_ref[...]
        o_ref[...] = out.astype(o_ref.dtype)
    return kernel


# ---------------------------------------------------------------------------
# One-time parameter prep (NOT per-forward): PyTorch W (out,in) -> (in,out) bf16.
# ---------------------------------------------------------------------------
def prepare_params(torch_params):
    p = torch_params
    return {
        "w1t": jnp.asarray(p["w1"]).T.astype(jnp.bfloat16),
        "w2t": jnp.asarray(p["w2"]).T.astype(jnp.bfloat16),
        "w3t": jnp.asarray(p["w3"]).T.astype(jnp.bfloat16),
        "b1": jnp.asarray(p["b1"]).reshape(1, -1).astype(jnp.float32),
        "b2": jnp.asarray(p["b2"]).reshape(1, -1).astype(jnp.float32),
        "b3": jnp.asarray(p["b3"]).reshape(1, -1).astype(jnp.float32),
    }


# ---------------------------------------------------------------------------
# Per-generation defaults (tile cap, VMEM cap, bf16-tanh, 2-TC sharding).
# ---------------------------------------------------------------------------
def _chip_defaults():
    try:
        kind = jax.devices()[0].device_kind.lower()
    except Exception:  # pragma: no cover - defensive fallback
        kind = ""
    is_v7 = "v7" in kind
    is_pre_v6 = any(t in kind for t in ("v2", "v3", "v4", "v5"))
    tile_cap = 1024 if is_v7 else 2048           # v7x: 64 MiB/TC -> keep tiles smaller
    vmem_cap = (56 << 20) if is_v7 else (100 << 20)
    bf16_tanh = not is_pre_v6                    # bf16 EUP exists on v6e/v7x only
    want_core_parallel = is_v7                   # shard batch grid over v7x's 2 TCs
    return tile_cap, vmem_cap, bf16_tanh, want_core_parallel


def _vmem_budget(tile_b, D0, D1, D2, D3):
    weight_bytes = 2 * (D0 * D1 + D1 * D2 + D2 * D3) + 4 * (D1 + D2 + D3)   # resident, single-buffered
    io_bytes = 2 * (tile_b * D0 * 4 + tile_b * D3 * 4)                       # double-buffered f32 x / f32 out
    act_bytes = 4 * tile_b * (D1 + D2) + 2 * tile_b * max(D0, D1, D2)        # f32 activations + bf16 temps
    return weight_bytes + io_bytes + act_bytes + (6 << 20)                   # + compiler headroom


# ---------------------------------------------------------------------------
# Wrapper
# ---------------------------------------------------------------------------
def generator_encode(x, prepped, *, tile_b=None):
    """x: [B, data_dim] float32.  prepped: output of prepare_params()."""
    B, D0 = x.shape
    w1t, w2t, w3t = prepped["w1t"], prepped["w2t"], prepped["w3t"]
    b1, b2, b3 = prepped["b1"], prepped["b2"], prepped["b3"]
    D1, D2, D3 = w1t.shape[1], w2t.shape[1], w3t.shape[1]
    assert w1t.shape[0] == D0 and w2t.shape[0] == D1 and w3t.shape[0] == D2

    tile_cap, vmem_cap, bf16_tanh, want_core_parallel = _chip_defaults()

    if tile_b is None:
        tile_b = min(tile_cap, B)
        # Auto-shrink if the VMEM budget for this tile would blow the per-gen cap.
        while tile_b > 256 and _vmem_budget(tile_b, D0, D1, D2, D3) > vmem_cap:
            tile_b //= 2

    # Pad batch so the grid divides evenly; padded rows (tanh(finite)) are sliced off.
    n_tiles = -(-B // tile_b)
    Bp = n_tiles * tile_b
    xf = x.astype(jnp.float32)
    if Bp != B:
        xf = jnp.pad(xf, ((0, Bp - B), (0, 0)))

    # Constant index_map => operand resident across the grid; single-buffer it.
    def resident(shape):
        return pl.BlockSpec(shape, lambda i: (0,) * len(shape),
                            pipeline_mode=pl.Buffered(buffer_count=1))

    vmem_limit = int(min(max(_vmem_budget(tile_b, D0, D1, D2, D3), 32 << 20), vmem_cap))

    # On v7x, core_parallel guarantees the batch axis splits across both TCs;
    # only use it when there are >=2 evenly splittable tiles.
    if want_core_parallel and n_tiles >= 2 and n_tiles % 2 == 0:
        batch_semantics = pltpu.CORE_PARALLEL
    else:
        batch_semantics = pltpu.PARALLEL

    tanh_dtype = jnp.bfloat16 if bf16_tanh else jnp.float32
    kernel = _make_mlp_encode_kernel(tanh_dtype)

    out = pl.pallas_call(
        kernel,
        out_shape=jax.ShapeDtypeStruct((Bp, D3), jnp.float32),
        grid_spec=pltpu.PrefetchScalarGridSpec(
            num_scalar_prefetch=0,
            grid=(n_tiles,),
            in_specs=[
                pl.BlockSpec((tile_b, D0), lambda i: (i, 0)),   # x tile (pipelined, f32)
                resident((D0, D1)), resident((1, D1)),          # layer 1
                resident((D1, D2)), resident((1, D2)),          # layer 2
                resident((D2, D3)), resident((1, D3)),          # layer 3
            ],
            # Real config (rep_dim=512) is lane-dense; toy rep_dim=32 equals the
            # full array dim so the spec stays legal (masked store only at toy scale).
            out_specs=pl.BlockSpec((tile_b, D3), lambda i: (i, 0)),
        ),
        compiler_params=pltpu.CompilerParams(
            dimension_semantics=(batch_semantics,),
            vmem_limit_bytes=vmem_limit,
        ),
    )(xf, w1t, b1, w2t, b2, w3t, b3)
    return out[:B] if Bp != B else out


# ---------------------------------------------------------------------------
# Synthetic init + references
# ---------------------------------------------------------------------------
def init_params(key, layers_num):
    """Deterministic synthetic init, PyTorch nn.Linear layout: W (out, in), b (out,)."""
    d0, d1, d2, d3 = layers_num
    ks = jax.random.split(key, 6)
    scale = lambda fan_in: 1.0 / jnp.sqrt(jnp.float32(fan_in))
    return {
        "w1": jax.random.normal(ks[0], (d1, d0), jnp.float32) * scale(d0),
        "b1": jax.random.normal(ks[1], (d1,), jnp.float32) * scale(d0),
        "w2": jax.random.normal(ks[2], (d2, d1), jnp.float32) * scale(d1),
        "b2": jax.random.normal(ks[3], (d2,), jnp.float32) * scale(d1),
        "w3": jax.random.normal(ks[4], (d3, d2), jnp.float32) * scale(d2),
        "b3": jax.random.normal(ks[5], (d3,), jnp.float32) * scale(d2),
    }


def reference_encode_f32(x, p):
    h1 = jnp.tanh(x @ p["w1"].T + p["b1"])
    h2 = jnp.tanh(h1 @ p["w2"].T + p["b2"])
    return h2 @ p["w3"].T + p["b3"]


def reference_encode_mixed(x, p, tanh_dtype):
    """Mirrors the kernel's precision recipe exactly (bf16 MXU, f32 acc/bias, tanh in tanh_dtype)."""
    f32 = jnp.float32
    w1 = p["w1"].T.astype(jnp.bfloat16)
    w2 = p["w2"].T.astype(jnp.bfloat16)
    w3 = p["w3"].T.astype(jnp.bfloat16)
    a1 = jnp.dot(x.astype(jnp.bfloat16), w1, preferred_element_type=f32) + p["b1"]
    h1 = jnp.tanh(a1.astype(tanh_dtype)).astype(jnp.bfloat16)
    a2 = jnp.dot(h1, w2, preferred_element_type=f32) + p["b2"]
    h2 = jnp.tanh(a2.astype(tanh_dtype)).astype(jnp.bfloat16)
    return jnp.dot(h2, w3, preferred_element_type=f32) + p["b3"]


if __name__ == "__main__":
    # Small-scale analogue of en_layers_num = [data_dim, 2048, 1024, rep_dim]
    # (module hardcodes a 3-layer MLP with Tanh after the first two layers).
    batch = 8
    data_dim, hid1, hid2, rep_dim = 128, 256, 128, 32
    layers_num = [data_dim, hid1, hid2, rep_dim]

    key = jax.random.PRNGKey(0)
    kx, kp = jax.random.split(key)
    x = jax.random.normal(kx, (batch, data_dim), jnp.float32)
    params = init_params(kp, layers_num)
    prepped = prepare_params(params)   # one-time transpose/cast, hoisted out of the call

    # Jit the wrapper so any padding fuses with the producer of x.
    encode = jax.jit(lambda xx: generator_encode(xx, prepped))
    out = jax.block_until_ready(encode(x))
    assert out.shape == (batch, rep_dim)
    assert bool(jnp.all(jnp.isfinite(out)))

    _, _, bf16_tanh, _ = _chip_defaults()
    tanh_dtype = jnp.bfloat16 if bf16_tanh else jnp.float32
    ref_mixed = reference_encode_mixed(x, params, tanh_dtype)   # same precision recipe as kernel
    ref_f32 = reference_encode_f32(x, params)                   # full f32 PyTorch-equivalent path
    assert jnp.allclose(out, ref_mixed, atol=5e-3, rtol=5e-3), "mismatch vs precision-matched reference"
    assert jnp.allclose(out, ref_f32, atol=5e-2, rtol=5e-2), "mismatch vs f32 reference"
    print("KERNEL_OK")
</pallas_src>

<mosaic_0001>
module attributes {stable_mosaic.version = 11 : i64} {
  func.func @kernel(%arg0: i32, %arg1: memref<8x128xf32, #tpu.memory_space<vmem>>, %arg2: memref<128x256xbf16, #tpu.memory_space<vmem>>, %arg3: memref<1x256xf32, #tpu.memory_space<vmem>>, %arg4: memref<256x128xbf16, #tpu.memory_space<vmem>>, %arg5: memref<1x128xf32, #tpu.memory_space<vmem>>, %arg6: memref<128x32xbf16, #tpu.memory_space<vmem>>, %arg7: memref<1x32xf32, #tpu.memory_space<vmem>>, %arg8: memref<8x32xf32, #tpu.memory_space<vmem>>) attributes {dimension_semantics = [#tpu.dimension_semantics<parallel>], iteration_bounds = array<i64: 1>, scalar_prefetch = 0 : i64, scratch_operands = 0 : i64, tpu.core_type = #tpu.core_type<tc>, window_params = [{transform_indices = @transform_0, window_bounds = array<i64: 8, 128>}, {pipeline_mode = #tpu.pipeline_mode<synchronous>, transform_indices = @transform_1, window_bounds = array<i64: 128, 256>}, {pipeline_mode = #tpu.pipeline_mode<synchronous>, transform_indices = @transform_2, window_bounds = array<i64: 1, 256>}, {pipeline_mode = #tpu.pipeline_mode<synchronous>, transform_indices = @transform_3, window_bounds = array<i64: 256, 128>}, {pipeline_mode = #tpu.pipeline_mode<synchronous>, transform_indices = @transform_4, window_bounds = array<i64: 1, 128>}, {pipeline_mode = #tpu.pipeline_mode<synchronous>, transform_indices = @transform_5, window_bounds = array<i64: 128, 32>}, {pipeline_mode = #tpu.pipeline_mode<synchronous>, transform_indices = @transform_6, window_bounds = array<i64: 1, 32>}, {transform_indices = @transform_7, window_bounds = array<i64: 8, 32>}]} {
    %c0 = arith.constant 0 : index
    %c0_0 = arith.constant 0 : index
    %0 = vector.load %arg1[%c0, %c0_0] : memref<8x128xf32, #tpu.memory_space<vmem>>, vector<8x128xf32>
    %1 = arith.truncf %0 : vector<8x128xf32> to vector<8x128xbf16>
    %c0_1 = arith.constant 0 : index
    %c0_2 = arith.constant 0 : index
    %2 = vector.load %arg2[%c0_1, %c0_2] : memref<128x256xbf16, #tpu.memory_space<vmem>>, vector<128x256xbf16>
    %cst = arith.constant dense<0.000000e+00> : vector<8x256xf32>
    %3 = tpu.matmul %1, %2, %cst {dimension_numbers = #tpu.dot_dimension_numbers<[1], [0], [0], [1], [0, 0, 1, 1], [], []>} : vector<8x128xbf16>, vector<128x256xbf16>, vector<8x256xf32> -> vector<8x256xf32>
    %c0_3 = arith.constant 0 : index
    %c0_4 = arith.constant 0 : index
    %4 = vector.load %arg3[%c0_3, %c0_4] : memref<1x256xf32, #tpu.memory_space<vmem>>, vector<1x256xf32>
    %5 = vector.broadcast %4 : vector<1x256xf32> to vector<8x256xf32>
    %6 = arith.addf %3, %5 : vector<8x256xf32>
    %7 = arith.truncf %6 : vector<8x256xf32> to vector<8x256xbf16>
    %8 = math.tanh %7 : vector<8x256xbf16>
    %c0_5 = arith.constant 0 : index
    %c0_6 = arith.constant 0 : index
    %9 = vector.load %arg4[%c0_5, %c0_6] : memref<256x128xbf16, #tpu.memory_space<vmem>>, vector<256x128xbf16>
    %cst_7 = arith.constant dense<0.000000e+00> : vector<8x128xf32>
    %10 = tpu.matmul %8, %9, %cst_7 {dimension_numbers = #tpu.dot_dimension_numbers<[1], [0], [0], [1], [0, 0, 1, 1], [], []>} : vector<8x256xbf16>, vector<256x128xbf16>, vector<8x128xf32> -> vector<8x128xf32>
    %c0_8 = arith.constant 0 : index
    %c0_9 = arith.constant 0 : index
    %11 = vector.load %arg5[%c0_8, %c0_9] : memref<1x128xf32, #tpu.memory_space<vmem>>, vector<1x128xf32>
    %12 = vector.broadcast %11 : vector<1x128xf32> to vector<8x128xf32>
    %13 = arith.addf %10, %12 : vector<8x128xf32>
    %14 = arith.truncf %13 : vector<8x128xf32> to vector<8x128xbf16>
    %15 = math.tanh %14 : vector<8x128xbf16>
    %c0_10 = arith.constant 0 : index
    %c0_11 = arith.constant 0 : index
    %16 = vector.load %arg6[%c0_10, %c0_11] : memref<128x32xbf16, #tpu.memory_space<vmem>>, vector<128x32xbf16>
    %cst_12 = arith.constant dense<0.000000e+00> : vector<8x32xf32>
    %17 = tpu.matmul %15, %16, %cst_12 {dimension_numbers = #tpu.dot_dimension_numbers<[1], [0], [0], [1], [0, 0, 1, 1], [], []>} : vector<8x128xbf16>, vector<128x32xbf16>, vector<8x32xf32> -> vector<8x32xf32>
    %c0_13 = arith.constant 0 : index
    %c0_14 = arith.constant 0 : index
    %18 = vector.load %arg7[%c0_13, %c0_14] : memref<1x32xf32, #tpu.memory_space<vmem>>, vector<1x32xf32>
    %19 = vector.broadcast %18 : vector<1x32xf32> to vector<8x32xf32>
    %20 = arith.addf %17, %19 : vector<8x32xf32>
    %c0_15 = arith.constant 0 : index
    %c0_16 = arith.constant 0 : index
    %21 = vector.load %arg8[%c0_15, %c0_16] : memref<8x32xf32, #tpu.memory_space<vmem>>, vector<8x32xf32>
    tpu.vector_store %arg8[%c0_15, %c0_16], %20 {strides = array<i32>} : memref<8x32xf32, #tpu.memory_space<vmem>>, vector<8x32xf32>,
    return
  }
  func.func @transform_0(%arg0: i32) -> (i32, i32) {
    %c0_i32 = arith.constant 0 : i32
    %c0_i32_0 = arith.constant 0 : i32
    return %arg0, %c0_i32 : i32, i32
  }
  func.func @transform_1(%arg0: i32) -> (i32, i32) {
    %c0_i32 = arith.constant 0 : i32
    %c0_i32_0 = arith.constant 0 : i32
    %c0_i32_1 = arith.constant 0 : i32
    return %c0_i32, %c0_i32_0 : i32, i32
  }
  func.func @transform_2(%arg0: i32) -> (i32, i32) {
    %c0_i32 = arith.constant 0 : i32
    %c0_i32_0 = arith.constant 0 : i32
    %c0_i32_1 = arith.constant 0 : i32
    return %c0_i32, %c0_i32_0 : i32, i32
  }
  func.func @transform_3(%arg0: i32) -> (i32, i32) {
    %c0_i32 = arith.constant 0 : i32
    %c0_i32_0 = arith.constant 0 : i32
    %c0_i32_1 = arith.constant 0 : i32
    return %c0_i32, %c0_i32_0 : i32, i32
  }
  func.func @transform_4(%arg0: i32) -> (i32, i32) {
    %c0_i32 = arith.constant 0 : i32
    %c0_i32_0 = arith.constant 0 : i32
    %c0_i32_1 = arith.constant 0 : i32
    return %c0_i32, %c0_i32_0 : i32, i32
  }
  func.func @transform_5(%arg0: i32) -> (i32, i32) {
    %c0_i32 = arith.constant 0 : i32
    %c0_i32_0 = arith.constant 0 : i32
    %c0_i32_1 = arith.constant 0 : i32
    return %c0_i32, %c0_i32_0 : i32, i32
  }
  func.func @transform_6(%arg0: i32) -> (i32, i32) {
    %c0_i32 = arith.constant 0 : i32
    %c0_i32_0 = arith.constant 0 : i32
    %c0_i32_1 = arith.constant 0 : i32
    return %c0_i32, %c0_i32_0 : i32, i32
  }
  func.func @transform_7(%arg0: i32) -> (i32, i32) {
    %c0_i32 = arith.constant 0 : i32
    %c0_i32_0 = arith.constant 0 : i32
    return %arg0, %c0_i32 : i32, i32
  }
}

</mosaic_0001>

<bundles_post_ra>
// kernel: _lambda_.1
= control target key start
LH: loop header
LB: loop body
LE: loop exit
PB: predicated region body
PF: predicated region fallthrough
CT: control target
= control target key end

     0   :  { %12 = vsyncpa [#allocation3], 0  ;;  %s886_s0 = inlined_call_operand.hbm [shape: f32[8,128], index: 0, kind: input, shape index: {}]   ;;  %s887_s1 = inlined_call_operand.hbm [shape: bf16[128,256], index: 1, kind: input, shape index: {}]   ;;  %s888_s2 = inlined_call_operand.vmem [shape: f32[1,256], index: 2, kind: input, shape index: {}]   ;;  %s889_s3 = inlined_call_operand.hbm [shape: bf16[256,128], index: 3, kind: input, shape index: {}]   ;;  %s890_s4 = inlined_call_operand.vmem [shape: f32[1,128], index: 4, kind: input, shape index: {}]   ;;  %s891_s5 = inlined_call_operand.hbm [shape: bf16[128,32], index: 5, kind: input, shape index: {}]   ;;  %s892_s6 = inlined_call_operand.vmem [shape: f32[1,32], index: 6, kind: input, shape index: {}]   ;;  %s893_s7 = inlined_call_operand.hbm [shape: f32[8,32], index: 7, kind: output, shape index: {}]  }
   0x1   :  { %13 = vsyncpa [#allocation6], 0 }
   0x2   :  { %14 = vsyncpa [#allocation9], 0 }
   0x3   :  { %15 = vsyncpa [#allocation4], 0  ;;  %s810_s24 = smov [#allocation5]  }
   0x4   :  { %s31_s25 = sshll.u32 %s810_s24, 4  ;;  %s32_s25 = int_to_ptr.vmem [resolvable:$true] %s31_s25 }
   0x5   :  { %s710_s26 = scalar_lea.vmem %s32_s25, 2048  ;;  %p715_p1 = scmp.lt.s32.totalorder %s32_s25, %s32_s25 }
   0x6   :  { %p711_p0 = scmp.ne.s32.totalorder %s32_s25, %s710_s26  ;;  %p716_p2 = scmp.lt.s32.totalorder %s710_s26, %s710_s26 }
   0x8   :  { %p717_p3 = por %p716_p2, %p715_p1 }
   0xa   :  { %p718_p4 = pnand %p717_p3, %p711_p0 }
   0xc   :  { %721 = shalt.err (!%p718_p4)
}
   0xd   :  { %s811_s27 = smov 128   ;;  %s812_s28 = smov 8  }
   0xe   :  { %37 = dma.hbm_to_vmem [thread:$0]  %s887_s1, 2048, %s32_s25, [#allocation6], %s811_s27, %s811_s27, %s812_s28  }
   0xf   :  { %s813_s8 = smov [#allocation2]   ;;  %s814_s10 = smov [#allocation7]  }
  0x10   :  { %s22_s9 = sshll.u32 %s813_s8, 4  ;;  %s45_s11 = sshll.u32 %s814_s10, 4  ;;  %s23_s9 = int_to_ptr.vmem [resolvable:$true] %s22_s9  ;;  %s46_s11 = int_to_ptr.vmem [resolvable:$true] %s45_s11 }
  0x11   :  { %s730_s12 = scalar_lea.vmem %s23_s9, 128  ;;  %p735_p6 = scmp.lt.s32.totalorder %s23_s9, %s23_s9 }
  0x12   :  { %p731_p5 = scmp.ne.s32.totalorder %s23_s9, %s730_s12  ;;  %p736_p7 = scmp.lt.s32.totalorder %s730_s12, %s730_s12 }
  0x14   :  { %p737_p8 = por %p736_p7, %p735_p6 }
  0x16   :  { %p738_p9 = pnand %p737_p8, %p731_p5 }
  0x18   :  { %741 = shalt.err (!%p738_p9)
}
  0x19   :  { %25 = dma.hbm_to_vmem [thread:$0]  %s886_s0, 128, %s23_s9, [#allocation3]  }
  0x1a   :  { %s750_s15 = scalar_lea.vmem %s46_s11, 2048  ;;  %p755_p11 = scmp.lt.s32.totalorder %s46_s11, %s46_s11 }
  0x1b   :  { %p751_p10 = scmp.ne.s32.totalorder %s46_s11, %s750_s15  ;;  %p756_p12 = scmp.lt.s32.totalorder %s750_s15, %s750_s15 }
  0x1d   :  { %p757_p13 = por %p756_p12, %p755_p11 }
  0x1f   :  { %p758_p0 = pnand %p757_p13, %p751_p10 }
  0x21   :  { %761 = shalt.err (!%p758_p0)
}
  0x22   :  { %s815_s1 = smov 64   ;;  %s816_s16 = smov 4  }
  0x23   :  { %51 = dma.hbm_to_vmem [thread:$0]  %s889_s3, 2048, %s46_s11, [#allocation6], %s815_s1, %s815_s1, %s816_s16  }
  0x24   :  { %s817_s19 = smov [#allocation8]  }
  0x25   :  { %s59_s20 = sshll.u32 %s817_s19, 4  ;;  %s60_s20 = int_to_ptr.vmem [resolvable:$true] %s59_s20 }
  0x26   :  { %s770_s21 = scalar_lea.vmem %s60_s20, 1024  ;;  %p775_p2 = scmp.lt.s32.totalorder %s60_s20, %s60_s20 }
  0x27   :  { %p771_p1 = scmp.ne.s32.totalorder %s60_s20, %s770_s21  ;;  %p776_p3 = scmp.lt.s32.totalorder %s770_s21, %s770_s21 }
  0x29   :  { %p777_p4 = por %p776_p3, %p775_p2 }
  0x2b   :  { %p778_p5 = pnand %p777_p4, %p771_p1 }
  0x2d   :  { %781 = shalt.err (!%p778_p5)
}
  0x2e   :  { %65 = dma.hbm_to_vmem [thread:$0]  %s891_s5, 1024, %s60_s20, [#allocation9], %s815_s1, %s815_s1, %s816_s16  }
  0x2f   :  { %802 = dma.done.wait [#allocation3], 128  }
  0x30   :  { %803 = vsyncadd [#allocation3], 4294967168 }
  0x31   :  { %804 = dma.done.wait [#allocation6], 4096  }
  0x32   :  { %805 = vsyncadd [#allocation6], 4294963200 }
  0x33   :  { %806 = dma.done.wait [#allocation9], 1024  }
  0x34   :  { %807 = vsyncadd [#allocation9], 4294966272  ;;  %v818_v0 = vmov 0   ;;  %v648_v1 = vld [vmem:[#allocation5 + $0x74] ss:$8 sps:$4 sm:$0xff]   ;;  %v676_v15 = vld [vmem:[#allocation7 + $0x68] sm:$0xff]   ;;  %v101_v38 = vlaneseq }
  0x35   :  { %223 = vmatprep.mubr.bf16.mxu0 %v818_v0  ;;  %v650_v2 = vld [vmem:[#allocation5 + $0x70] ss:$8 sps:$4 sm:$0xff]   ;;  %191 = vmatprep.subr.bf16.mxu0 %v648_v1  ;;  %v651_v3 = vld [vmem:[#allocation5 + $0x64] ss:$8 sps:$4 sm:$0xff]   ;;  %v653_v4 = vld [vmem:[#allocation5 + $0x60] ss:$8 sps:$4 sm:$0xff]  }
  0x36   :  { %192 = vmatpush1.bf16.msra.mxu0 %v650_v2  ;;  %v654_v5 = vld [vmem:[#allocation5 + $0x54] ss:$8 sps:$4 sm:$0xff]   ;;  %v656_v6 = vld [vmem:[#allocation5 + $0x50] ss:$8 sps:$4 sm:$0xff]   ;;  %v657_v7 = vld [vmem:[#allocation5 + $0x44] ss:$8 sps:$4 sm:$0xff]  }
  0x37   :  { %193 = vmatprep.subr.bf16.mxu0 %v651_v3  ;;  %v659_v8 = vld [vmem:[#allocation5 + $0x40] ss:$8 sps:$4 sm:$0xff]   ;;  %v660_v9 = vld [vmem:[#allocation5 + $0x34] ss:$8 sps:$4 sm:$0xff]   ;;  %v662_v12 = vld [vmem:[#allocation5 + $0x30] ss:$8 sps:$4 sm:$0xff]  }
  0x38   :  { %v672_v10 = vld [vmem:[#allocation7 + $0x78] sm:$0xff]   ;;  %v674_v13 = vld [vmem:[#allocation7 + $0x70] sm:$0xff]   ;;  %v663_v16 = vld [vmem:[#allocation5 + $0x24] ss:$8 sps:$4 sm:$0xff]   ;;  %v819_v36 = vmov 0.0   ;;  %v102_v39 = vshrl.u32 %v101_v38, 7 }
  0x39   :  { %v673_v11 = vld [vmem:[#allocation7 + $0x38] sm:$0xff]   ;;  %585 = vmatprep.subr.bf16.mxu1 %v672_v10  ;;  %v675_v14 = vld [vmem:[#allocation7 + $0x30] sm:$0xff]   ;;  %v665_v17 = vld [vmem:[#allocation5 + $0x20] ss:$8 sps:$4 sm:$0xff]   ;;  %vm820_vm0 = vmmov 0   ;;  %s821_s26 = smov [#allocation10]  }
  0x3a   :  { %194 = vmatpush1.bf16.msra.mxu0 %v653_v4  ;;  %586 = vmatpush3.bf16.msra.mxu1 %v673_v11  ;;  %v666_v18 = vld [vmem:[#allocation5 + $0x14] ss:$8 sps:$4 sm:$0xff]   ;;  %v668_v19 = vld [vmem:[#allocation5 + $0x10] ss:$8 sps:$4 sm:$0xff]   ;;  %v669_v20 = vld [vmem:[#allocation5 + $0x4] ss:$8 sps:$4 sm:$0xff]  }
  0x3b   :  { %195 = vmatprep.subr.bf16.mxu0 %v654_v5  ;;  %587 = vmatprep.subr.bf16.mxu1 %v674_v13  ;;  %v671_v21 = vld [vmem:[#allocation5] ss:$8 sps:$4 sm:$0xff]   ;;  %v81_v22 = vld [vmem:[#allocation2] sm:$0xff]  ;;  %v682_v29 = vld [vmem:[#allocation7 + $0x50] sm:$0xff]   ;;  %v103_v40 = vsub.s32 0, %v102_v39  ;;  %v107_v42 = vsub.s32 1, %v102_v39 }
  0x3c   :  { %v82_v23 = vpack.c.bf16 %v81_v22, %v81_v22  ;;  %v677_v24 = vld [vmem:[#allocation7 + $0x28] sm:$0xff]   ;;  %v678_v25 = vld [vmem:[#allocation7 + $0x60] sm:$0xff]   ;;  %v680_v27 = vld [vmem:[#allocation7 + $0x58] sm:$0xff]   ;;  %s532_s27 = sshll.u32 %s821_s26, 4  ;;  %vm524_vm1 = vcmask 261120   ;;  %s533_s27 = int_to_ptr.vmem [resolvable:$true] %s532_s27 }
  0x3d   :  { %v679_v26 = vld [vmem:[#allocation7 + $0x20] sm:$0xff]   ;;  %v681_v28 = vld [vmem:[#allocation7 + $0x18] sm:$0xff]   ;;  %v683_v30 = vld [vmem:[#allocation7 + $0x10] sm:$0xff]   ;;  %p787_p7 = scmp.lt.s32.totalorder %s533_s27, %s533_s27 }
  0x3e   :  { %196 = vmatpush1.bf16.msra.mxu0 %v656_v6  ;;  %588 = vmatpush3.bf16.msra.mxu1 %v675_v14  ;;  %v684_v31 = vld [vmem:[#allocation7 + $0x48] sm:$0xff]   ;;  %v686_v33 = vld [vmem:[#allocation7 + $0x40] sm:$0xff]   ;;  %v688_v35 = vld [vmem:[#allocation8 + $0x38] sm:$0xff]  }
  0x3f   :  { %197 = vmatprep.subr.bf16.mxu0 %v657_v7  ;;  %589 = vmatprep.subr.bf16.mxu1 %v676_v15  ;;  %v685_v32 = vld [vmem:[#allocation7 + $0x8] sm:$0xff]   ;;  %v687_v34 = vld [vmem:[#allocation7] sm:$0xff]   ;;  %v689_v37 = vld [vmem:[#allocation8 + $0x30] sm:$0xff]  }
  0x40   :  { %v99_v41 = vld [vmem:[%s888_s2] sm:$0x3]  ;;  %v690_v55 = vld [vmem:[#allocation8 + $0x28] sm:$0xff]   ;;  %v691_v56 = vld [vmem:[#allocation8 + $0x20] sm:$0xff]  }
  0x41   :  { %v104_v43 = vrot.slane %v99_v41, %v103_v40  ;;  %v108_v44 = vrot.slane %v99_v41, %v107_v42  ;;  %v692_v57 = vld [vmem:[#allocation8 + $0x18] sm:$0xff]   ;;  %v693_v58 = vld [vmem:[#allocation8 + $0x10] sm:$0xff]   ;;  %v694_v59 = vld [vmem:[#allocation8 + $0x8] sm:$0xff]  }
  0x42   :  { %198 = vmatpush1.bf16.msra.mxu0 %v659_v8  ;;  %590 = vmatpush3.bf16.msra.mxu1 %v677_v24  ;;  %v695_v60 = vld [vmem:[#allocation8] sm:$0xff]   ;;  %v559_v62 = vld [vmem:[%s890_s4] ss:$0 sm:$0xff]  ;;  %s782_s4 = scalar_lea.vmem %s533_s27, 128 }
  0x43   :  { %199 = vmatprep.subr.bf16.mxu0 %v660_v9  ;;  %591 = vmatprep.subr.bf16.mxu1 %v678_v25  ;;  %v576_v6 = vld [vmem:[%s892_s6] ss:$0 sm:$0xff]  ;;  %p783_p6 = scmp.ne.s32.totalorder %s533_s27, %s782_s4  ;;  %p788_p8 = scmp.lt.s32.totalorder %s782_s4, %s782_s4 }
  0x45   :  { %p789_p9 = por %p788_p8, %p787_p7 }
  0x46   :  { %200 = vmatpush1.bf16.msra.mxu0 %v662_v12  ;;  %592 = vmatpush3.bf16.msra.mxu1 %v679_v26 }
  0x47   :  { %201 = vmatprep.subr.bf16.mxu0 %v663_v16  ;;  %593 = vmatprep.subr.bf16.mxu1 %v680_v27  ;;  %p790_p10 = pnand %p789_p9, %p783_p6 }
  0x4a   :  { %202 = vmatpush1.bf16.msra.mxu0 %v665_v17  ;;  %594 = vmatpush3.bf16.msra.mxu1 %v681_v28 }
  0x4b   :  { %203 = vmatprep.subr.bf16.mxu0 %v666_v18  ;;  %595 = vmatprep.subr.bf16.mxu1 %v682_v29 }
  0x4e   :  { %204 = vmatpush1.bf16.msra.mxu0 %v668_v19  ;;  %596 = vmatpush3.bf16.msra.mxu1 %v683_v30 }
  0x4f   :  { %205 = vmatprep.subr.bf16.mxu0 %v669_v20  ;;  %597 = vmatprep.subr.bf16.mxu1 %v684_v31 }
  0x52   :  { %206 = vmatpush1.bf16.msra.mxu0 %v671_v21  ;;  %598 = vmatpush3.bf16.msra.mxu1 %v685_v32 }
  0x53   :  { %599 = vmatprep.subr.bf16.mxu1 %v686_v33  ;;  %616 = vmatprep.subr.bf16.mxu0 %v819_v36 }
  0x55   :  { %224 = vmatmul.mubr.bf16.vlgmr.msra.gmra.mxu0 %v82_v23 }
  0x56   :  { %600 = vmatpush3.bf16.msra.mxu1 %v687_v34  ;;  %617 = vmatpush3.bf16.msra.mxu0 %v688_v35 }
  0x57   :  { %618 = vmatprep.subr.bf16.mxu0 %v819_v36  ;;  %632 = vmatprep.mubr.msk.bf16.mxu0 %vm820_vm0, %v819_v36 }
  0x5a   :  { %619 = vmatpush3.bf16.msra.mxu0 %v689_v37 }
  0x5b   :  { %620 = vmatprep.subr.bf16.mxu0 %v819_v36 }
  0x5e   :  { %621 = vmatpush3.bf16.msra.mxu0 %v690_v55 }
  0x5f   :  { %622 = vmatprep.subr.bf16.mxu0 %v819_v36 }
  0x62   :  { %623 = vmatpush3.bf16.msra.mxu0 %v691_v56 }
  0x63   :  { %624 = vmatprep.subr.bf16.mxu0 %v819_v36 }
  0x66   :  { %625 = vmatpush3.bf16.msra.mxu0 %v692_v57 }
  0x67   :  { %626 = vmatprep.subr.bf16.mxu0 %v819_v36 }
  0x6a   :  { %627 = vmatpush3.bf16.msra.mxu0 %v693_v58 }
  0x6b   :  { %628 = vmatprep.subr.bf16.mxu0 %v819_v36 }
  0x6e   :  { %629 = vmatpush3.bf16.msra.mxu0 %v694_v59 }
  0x6f   :  { %630 = vmatprep.subr.bf16.mxu0 %v819_v36 }
  0x72   :  { %631 = vmatpush3.bf16.msra.mxu0 %v695_v60 }
 0x115   :  { %v225_v45 = vpop.f32.mrf.mxu0 }
 0x116   :  { %v226_v46 = vadd.f32 %v225_v45, %v104_v43 }
 0x117   :  { %v227_v47 = vpop.f32.mrf.mxu0 }
 0x118   :  { %v228_v48 = vadd.f32 %v227_v47, %v108_v44  ;;  %v232_v49 = vpack.c.bf16 %v226_v46, %v226_v46 }
 0x119   :  { %v229_v50 = vpop.f32.mrf.mxu0 }
 0x11a   :  { %v233_v51 = vpack.c.bf16 %v228_v48, %v228_v48 }
 0x11b   :  { %v230_v52 = vpop.f32.mrf.mxu0 }
 0x11c   :  { %696 = vtanh.bf16 %v233_v51 }
 0x11d   :  { %698 = vtanh.bf16 %v232_v49 }
 0x12a   :  { %v697_v53 = vpop.eup %696 }
 0x12b   :  { %v699_v54 = vpop.eup %698  ;;  %403 = vmatprep.mubr.bf16.mxu1 %v697_v53 }
 0x12c   :  { %404 = vmatmul.mubr.bf16.vlgmr.msra.gmra.mxu1 %v699_v54 }
 0x1ec   :  { %v601_v61 = vpop.f32.mrf.mxu1 }
 0x1ee   :  { %v602_v63 = vpop.f32.mrf.mxu1 }
 0x1ef   :  { %v603_v0 = vadd.f32 %v602_v63, %v601_v61 }
 0x1f0   :  { %v604_v1 = vpop.f32.mrf.mxu1 }
 0x1f1   :  { %v406_v2 = vadd.f32 %v603_v0, %v559_v62 }
 0x1f2   :  { %v605_v3 = vpop.f32.mrf.mxu1 }
 0x1f3   :  { %v411_v4 = vpack.c.bf16 %v406_v2, %v406_v2 }
 0x1f5   :  { %700 = vtanh.bf16 %v411_v4 }
 0x203   :  { %v701_v5 = vpop.eup %700 }
 0x204   :  { %633 = vmatmul.mubr.bf16.vlgmr.msra.gmra.mxu0 %v701_v5 }
 0x2c4   :  { %v518_v7 = vpop.f32.mrf.mxu0 }
 0x2c5   :  { %v519_v8 = vadd.f32 %v576_v6, %v518_v7 }
 0x2c6   :  { %v634_v9 = vpop.f32.mrf.mxu0 }
 0x2c7   :  { %525 = vst.msk [vmem:[#allocation10] sm:$0xff] %vm524_vm1, %v519_v8 }
 0x2c8   :  { %v521_v10 = vpop.f32.mrf.mxu0 }
 0x2c9   :  { %793 = shalt.err (!%p790_p10)
}
 0x2ca   :  { %535 = dma.vmem_to_hbm [thread:$0]  %s533_s27, 128, %s893_s7, [#allocation4]   ;;  %v635_v11 = vpop.f32.mrf.mxu0 }
 0x2cb   :  { %808 = dma.done.wait [#allocation4], 128  }
 0x2cc   :  { %809 = vsyncadd [#allocation4], 4294967168 }
 0x2cd   :  { %539 = vsyncpa [#allocation3], 1 }
 0x2ce   :  { %540 = vsyncpa [#allocation6], 1 }
 0x2cf   :  { %541 = vsyncpa [#allocation9], 1 }
 0x2d0   :  { %542 = vsyncpa [#allocation4], 1 }

</bundles_post_ra>
